<compile_context>
chip_gen: v5e
topology: v5e:2x2
jax: 0.10.0
libtpu: 0.0.40
codegen_flags: <defaults>
</compile_context>

<pallas_src>
import jax
import jax.numpy as jnp
from jax.experimental import pallas as pl
from jax.experimental.pallas import tpu as pltpu

_LANES = 128
_SUBLANES = 8
_DEFAULT_BLOCK_BYTES = 4 * 1024 * 1024    # ~4 MiB blocks: v7x-safe, near HBM roofline
_DEFAULT_VMEM_LIMIT = 32 * 1024 * 1024    # 3 streams x 2 buffers x 4 MiB ~ 24 MiB + headroom


def make_pe(d_model: int, max_seq_len: int = 512) -> jnp.ndarray:
    """Deterministic buffer init, mirroring the PyTorch loop exactly:

        pe[pos, i]   = sin(pos / 10000**(2*i/d_model))
        pe[pos, i+1] = cos(pos / 10000**(2*i/d_model))

    Note: the exponent uses 2*i/d_model where i is the *even* column index itself
    (not the pair index) — reproduced faithfully from the reference module.
    """
    pos = jnp.arange(max_seq_len, dtype=jnp.float32)[:, None]          # (L, 1)
    i_even = jnp.arange(0, d_model, 2, dtype=jnp.float32)[None, :]     # (1, D/2)
    div = jnp.power(jnp.float32(10000.0), 2.0 * i_even / d_model)      # (1, D/2)
    angle = pos / div                                                   # (L, D/2)
    pe = jnp.zeros((max_seq_len, d_model), dtype=jnp.float32)
    pe = pe.at[:, 0::2].set(jnp.sin(angle))
    pe = pe.at[:, 1::2].set(jnp.cos(angle))
    return pe


def _add_pe_kernel(x_ref, pe_ref, o_ref):
    # Elementwise hot path: one row-tile of x plus the matching row-tile of pe.
    o_ref[...] = (x_ref[...] + pe_ref[...]).astype(o_ref.dtype)


def _pick_row_tile(rows: int, row_bytes: int, target_block_bytes: int) -> int:
    """Multiple-of-8 row tile, as large as the block-byte budget allows (<= rows).

    Keeping tm a multiple of 8 keeps the pe BlockSpec legal even though pe has
    more rows than x; the partial last x/out block is masked by Pallas.
    """
    cap = max(_SUBLANES,
              (target_block_bytes // max(1, row_bytes)) // _SUBLANES * _SUBLANES)
    return min(cap, (rows // _SUBLANES) * _SUBLANES)


def positional_encoder_forward(x: jnp.ndarray,
                               pe: jnp.ndarray,
                               pe_flat: jnp.ndarray | None = None,
                               *,
                               target_block_bytes: int = _DEFAULT_BLOCK_BYTES,
                               vmem_limit_bytes: int = _DEFAULT_VMEM_LIMIT) -> jnp.ndarray:
    """x: (seq_len, d_model); pe: (max_seq_len, d_model) f32 buffer.

    pe_flat (optional): cached (max_seq_len*d_model/128, 128) view of pe, used
    for the lane-dense path when d_model is not a multiple of 128.
    """
    seq_len, d_model = x.shape
    max_seq_len, pe_d = pe.shape
    if pe_d != d_model:
        raise ValueError(f"pe d_model {pe_d} != x d_model {d_model}")
    if seq_len > max_seq_len:
        raise ValueError(f"seq_len {seq_len} exceeds max_seq_len {max_seq_len}")

    # Lane-dense view: if d_model doesn't fill the 128-lane vreg width, fold rows
    # so DMAs and stores use all lanes instead of masked partial stores.
    use_flat = (d_model % _LANES != 0
                and (seq_len * d_model) % _LANES == 0
                and (max_seq_len * d_model) % _LANES == 0)
    if use_flat:
        rows, cols = (seq_len * d_model) // _LANES, _LANES
        x2 = x.reshape(rows, cols)
        pe2 = pe_flat if pe_flat is not None else pe.reshape(
            (max_seq_len * d_model) // _LANES, _LANES)
    else:
        rows, cols = seq_len, d_model
        x2, pe2 = x, pe

    if rows >= _SUBLANES:
        tm = _pick_row_tile(rows, cols * 4, target_block_bytes)  # f32 pe sizing
    else:
        # Tiny input (< 8 rows): single full-array block; slice pe so its block
        # equals its full dims too (negligible cost at this size).
        tm = rows
        pe2 = pe2[:rows]

    grid = (pl.cdiv(rows, tm),)
    out2 = pl.pallas_call(
        _add_pe_kernel,
        out_shape=jax.ShapeDtypeStruct((rows, cols), x.dtype),
        grid=grid,
        in_specs=[
            pl.BlockSpec((tm, cols), lambda i: (i, 0)),   # x rows [i*tm, (i+1)*tm)
            pl.BlockSpec((tm, cols), lambda i: (i, 0)),   # same rows of the full pe
        ],
        out_specs=pl.BlockSpec((tm, cols), lambda i: (i, 0)),
        compiler_params=pltpu.CompilerParams(
            dimension_semantics=("parallel",),   # no cross-tile dependency
            vmem_limit_bytes=vmem_limit_bytes,
        ),
    )(x2, pe2)

    return out2.reshape(seq_len, d_model) if use_flat else out2


class PositionalEncoder:
    """Pallas counterpart of M_PositionalEncoder.

    Precomputes the pe buffer and (when d_model is not a multiple of 128) a
    cached lane-dense flattened slab, so the hot path never re-slices or
    re-reshapes pe.
    """

    def __init__(self, d_model: int, max_seq_len: int = 512):
        self.d_model = d_model
        self.max_seq_len = max_seq_len
        self.pe = make_pe(d_model, max_seq_len)
        total = d_model * max_seq_len
        if d_model % _LANES != 0 and total % _LANES == 0:
            self.pe_flat = self.pe.reshape(total // _LANES, _LANES)
        else:
            self.pe_flat = None

    def __call__(self, x: jnp.ndarray) -> jnp.ndarray:
        return positional_encoder_forward(x, self.pe, self.pe_flat)


if __name__ == "__main__":
    # Case 1: module-like usage at small shapes (seq_len=8, d_model=32).
    # Exercises the lane-dense flat path: (8, 32) -> (2, 128), single full block.
    d_model, max_seq_len, seq_len = 32, 64, 8
    enc = PositionalEncoder(d_model, max_seq_len)
    x = jax.random.normal(jax.random.PRNGKey(0), (seq_len, d_model), dtype=jnp.float32)
    out = jax.block_until_ready(enc(x))
    ref = x + enc.pe[:seq_len, :]
    assert out.shape == (seq_len, d_model)
    assert jnp.allclose(out, ref, atol=1e-6), "mismatch vs reference (small case)"

    # Case 2: lane-aligned d_model with a forced multi-block grid (tm=16, grid=(4,))
    # to validate that block-indexed pe rows beyond block 0 line up with x.
    d2, L2, s2 = 128, 128, 64
    x2 = jax.random.normal(jax.random.PRNGKey(0), (s2, d2), dtype=jnp.float32)
    pe2 = make_pe(d2, L2)
    out2 = jax.block_until_ready(
        positional_encoder_forward(x2, pe2, target_block_bytes=16 * d2 * 4))
    assert jnp.allclose(out2, x2 + pe2[:s2, :], atol=1e-6), "mismatch (tiled case)"

    # Case 3: lane-dense flat path with a partial (masked) last block:
    # seq_len=100, d_model=32 -> flat (25, 128); tm=24 -> grid=(2,), last block 1 row.
    d3, L3, s3 = 32, 512, 100
    enc3 = PositionalEncoder(d3, L3)
    x3 = jax.random.normal(jax.random.PRNGKey(0), (s3, d3), dtype=jnp.float32)
    out3 = jax.block_until_ready(enc3(x3))
    assert out3.shape == (s3, d3)
    assert jnp.allclose(out3, x3 + enc3.pe[:s3, :], atol=1e-6), "mismatch (partial block)"

    print("KERNEL_OK")
</pallas_src>

<mosaic_0001>
module attributes {stable_mosaic.version = 11 : i64} {
  func.func @_add_pe_kernel(%arg0: i32, %arg1: memref<2x128xf32, #tpu.memory_space<vmem>>, %arg2: memref<2x128xf32, #tpu.memory_space<vmem>>, %arg3: memref<2x128xf32, #tpu.memory_space<vmem>>) attributes {dimension_semantics = [#tpu.dimension_semantics<parallel>], iteration_bounds = array<i64: 1>, scalar_prefetch = 0 : i64, scratch_operands = 0 : i64, tpu.core_type = #tpu.core_type<tc>, window_params = [{transform_indices = @transform_0, window_bounds = array<i64: 2, 128>}, {transform_indices = @transform_1, window_bounds = array<i64: 2, 128>}, {transform_indices = @transform_2, window_bounds = array<i64: 2, 128>}]} {
    %c0 = arith.constant 0 : index
    %c0_0 = arith.constant 0 : index
    %0 = vector.load %arg1[%c0, %c0_0] : memref<2x128xf32, #tpu.memory_space<vmem>>, vector<2x128xf32>
    %c0_1 = arith.constant 0 : index
    %c0_2 = arith.constant 0 : index
    %1 = vector.load %arg2[%c0_1, %c0_2] : memref<2x128xf32, #tpu.memory_space<vmem>>, vector<2x128xf32>
    %2 = arith.addf %0, %1 : vector<2x128xf32>
    %c0_3 = arith.constant 0 : index
    %c0_4 = arith.constant 0 : index
    %3 = vector.load %arg3[%c0_3, %c0_4] : memref<2x128xf32, #tpu.memory_space<vmem>>, vector<2x128xf32>
    tpu.vector_store %arg3[%c0_3, %c0_4], %2 {strides = array<i32>} : memref<2x128xf32, #tpu.memory_space<vmem>>, vector<2x128xf32>,
    return
  }
  func.func @transform_0(%arg0: i32) -> (i32, i32) {
    %c0_i32 = arith.constant 0 : i32
    %c0_i32_0 = arith.constant 0 : i32
    return %arg0, %c0_i32 : i32, i32
  }
  func.func @transform_1(%arg0: i32) -> (i32, i32) {
    %c0_i32 = arith.constant 0 : i32
    %c0_i32_0 = arith.constant 0 : i32
    return %arg0, %c0_i32 : i32, i32
  }
  func.func @transform_2(%arg0: i32) -> (i32, i32) {
    %c0_i32 = arith.constant 0 : i32
    %c0_i32_0 = arith.constant 0 : i32
    return %arg0, %c0_i32 : i32, i32
  }
}

</mosaic_0001>

<bundles_post_ra>
// kernel: tpu_custom_call.1
= control target key start
LH: loop header
LB: loop body
LE: loop exit
PB: predicated region body
PF: predicated region fallthrough
CT: control target
= control target key end

     0   :  { %7 = vsyncpa [#allocation3], 0  ;;  %s170_s0 = inlined_call_operand.hbm [shape: f32[2,128], index: 0, kind: input, shape index: {}]   ;;  %s171_s1 = inlined_call_operand.hbm [shape: f32[2,128], index: 1, kind: input, shape index: {}]   ;;  %s172_s2 = inlined_call_operand.hbm [shape: f32[2,128], index: 2, kind: output, shape index: {}]  }
   0x1   :  { %8 = vsyncpa [#allocation6], 0 }
   0x2   :  { %9 = vsyncpa [#allocation4], 0  ;;  %s15_s11 = sshll.u32 %s170_s0, 4  ;;  %s143_s12 = smov [#allocation2]   ;;  %s16_s11 = int_to_ptr.hbm [resolvable:$true] %s15_s11 }
   0x3   :  { %s17_s13 = sshll.u32 %s143_s12, 4  ;;  %s26_s16 = sshll.u32 %s171_s1, 4  ;;  %s18_s13 = int_to_ptr.vmem [resolvable:$true] %s17_s13  ;;  %s27_s16 = int_to_ptr.hbm [resolvable:$true] %s26_s16 }
   0x4   :  { %20 = dma.hbm_to_vmem [thread:$0]  %s16_s11, 32, %s18_s13, [#allocation3]  }
   0x5   :  { %s144_s17 = smov [#allocation5]  }
   0x6   :  { %s28_s18 = sshll.u32 %s144_s17, 4  ;;  %s29_s18 = int_to_ptr.vmem [resolvable:$true] %s28_s18 }
   0x7   :  { %31 = dma.hbm_to_vmem [thread:$0]  %s27_s16, 32, %s29_s18, [#allocation6]  }
   0x8   :  { %137 = dma.done.wait [#allocation3], 32  }
   0x9   :  { %138 = vsyncadd [#allocation3], 4294967264 }
   0xa   :  { %139 = dma.done.wait [#allocation6], 32  }
   0xb   :  { %140 = vsyncadd [#allocation6], 4294967264  ;;  %s145_s19 = smov [#allocation7]   ;;  %s51_s22 = sshll.u32 %s172_s2, 4  ;;  %v40_v0 = vld [vmem:[#allocation2] sm:$0x3]  ;;  %s52_s22 = int_to_ptr.hbm [resolvable:$true] %s51_s22 }
   0xc   :  { %s49_s0 = sshll.u32 %s145_s19, 4  ;;  %v41_v1 = vld [vmem:[#allocation5] sm:$0x3]  ;;  %s50_s0 = int_to_ptr.vmem [resolvable:$true] %s49_s0 }
   0xd   :  { %v42_v2 = vadd.f32 %v41_v1, %v40_v0 }
   0xf   :  { %43 = vst [vmem:[#allocation7] sm:$0x3] %v42_v2 }
  0x10   :  { %54 = dma.vmem_to_hbm [thread:$0]  %s50_s0, 32, %s52_s22, [#allocation4]  }
  0x11   :  { %141 = dma.done.wait [#allocation4], 32  }
  0x12   :  { %142 = vsyncadd [#allocation4], 4294967264 }
  0x13   :  { %59 = vsyncpa [#allocation3], 1 }
  0x14   :  { %60 = vsyncpa [#allocation6], 1 }
  0x15   :  { %61 = vsyncpa [#allocation4], 1 }

</bundles_post_ra>
